<compile_context>
chip_gen: v5e
topology: v5e:2x2
jax: 0.10.0
libtpu: 0.0.40
codegen_flags: <defaults>
</compile_context>

<pallas_src>
import jax
import jax.numpy as jnp
import numpy as np
from jax.experimental import pallas as pl
from jax.experimental.pallas import tpu as pltpu

_HEADW = 128  # lane-dense fused head width (col 0 = energy, cols 1:4 = forces)


def _round_up(v, m):
    return ((v + m - 1) // m) * m


def _model_kernel(x_ref, augT_ref, w1_ref, b1_ref, wh_ref, bh_ref,
                  head_ref, part_ref):
    """One grid step = one independent tile of TN atoms (no carried state).

    head_ref : (TN, 128) bf16 lane-dense per-atom head (col 0 energy, cols 1:4 forces)
    part_ref : (8, 128)  f32 per-tile partial of aug^T @ head
               row 0     -> masked per-tile energy sum (col 0)
               rows 1:4  -> per-tile pos^T @ head (stress lives in cols 1:4)
    """
    # --- per-atom MLP: bf16 MXU operands, f32 accumulation, f32 bias/relu ----
    h = jnp.dot(x_ref[...], w1_ref[...],
                preferred_element_type=jnp.float32) + b1_ref[...]
    h = jnp.maximum(h, 0.0)                                          # (TN, Hp) f32

    head = jnp.dot(h.astype(jnp.bfloat16), wh_ref[...],
                   preferred_element_type=jnp.float32) + bh_ref[...]  # (TN, 128) f32
    head_bf = head.astype(jnp.bfloat16)
    head_ref[...] = head_bf

    # --- single bf16 MXU contraction over atoms: (8, TN) @ (TN, 128) ---------
    # augT = [valid_mask | pos^T | 0] so row 0 gives the masked energy sum and
    # rows 1:4 give pos^T @ head (stress in cols 1:4).  Padded atoms/columns
    # are multiplied by exact zeros, so they contribute nothing.
    part_ref[...] = jnp.dot(augT_ref[...], head_bf,
                            preferred_element_type=jnp.float32)


def _pick_tile(n, d, h_p, max_tile):
    """Largest 128-multiple atom tile that keeps double-buffered pipeline VMEM
    under a conservative budget (safe for v7x's 64 MiB VMEM)."""
    budget = 24 << 20
    # invariant weights are still double-buffered by the pipeline -> count 2x
    weight_bytes = 2 * (d * h_p * 2 + h_p * 4 + h_p * _HEADW * 2 + _HEADW * 4)
    # per-atom streaming bytes, double-buffered: x(bf16) + augT(bf16) + head(bf16)
    per_atom = 2 * (d * 2 + 8 * 2 + _HEADW * 2)
    tile = min(_round_up(max_tile, 128), max(_round_up(n, 128), 128))
    while tile > 128 and weight_bytes + tile * per_atom > budget:
        tile -= 128
    return tile


def model_wrapper_forward(x, pos, params, *, max_tile=2048):
    """Pallas equivalent of ModelWrapper.forward -> (energy, forces, stress)."""
    w1, b1, w2, b2, wf = params
    n, d = x.shape
    hdim = w1.shape[1]
    h_p = _round_up(hdim, 128)   # lane-dense hidden dim (zero-padded columns)

    bf16 = jnp.bfloat16

    # --- fused, lane-padded weights (padding contributes exactly zero) -------
    w1_p = jnp.zeros((d, h_p), bf16).at[:, :hdim].set(w1.astype(bf16))
    b1_p = jnp.zeros((1, h_p), jnp.float32).at[:, :hdim].set(
        b1.reshape(1, -1).astype(jnp.float32))
    w_head = jnp.zeros((h_p, _HEADW), bf16)
    w_head = w_head.at[:hdim, 0:1].set(w2.astype(bf16))
    w_head = w_head.at[:hdim, 1:4].set(wf.astype(bf16))
    b_head = jnp.zeros((1, _HEADW), jnp.float32).at[0, 0].set(
        b2.reshape(()).astype(jnp.float32))

    # --- atom tiling: 128-multiple tiles, zero padding + in-data mask --------
    tile_n = _pick_tile(n, d, h_p, max_tile)
    n_pad = _round_up(n, tile_n)
    num_tiles = n_pad // tile_n
    grid = (num_tiles,)

    x_p = jnp.zeros((n_pad, d), bf16).at[:n].set(x.astype(bf16))
    # pre-transposed augmented matrix: [mask | pos^T | 0], bf16 MXU operand
    aug_t = jnp.zeros((8, n_pad), bf16)
    aug_t = aug_t.at[0, :n].set(jnp.ones((n,), bf16))
    aug_t = aug_t.at[1:4, :n].set(pos.astype(bf16).T)

    cost = pl.CostEstimate(
        flops=2 * n_pad * (d * h_p + h_p * _HEADW + 8 * _HEADW),
        transcendentals=0,
        bytes_accessed=(n_pad * d * 2 + 8 * n_pad * 2        # x + augT reads (bf16)
                        + n_pad * _HEADW * 2                  # head slab write (bf16)
                        + num_tiles * 8 * _HEADW * 4          # per-tile partials
                        + d * h_p * 2 + h_p * 4               # W1 + b1
                        + h_p * _HEADW * 2 + _HEADW * 4),     # W_head + b_head
    )

    head_out, part = pl.pallas_call(
        _model_kernel,
        out_shape=(
            jax.ShapeDtypeStruct((n_pad, _HEADW), bf16),          # fused head slab
            jax.ShapeDtypeStruct((num_tiles, 8, _HEADW), jnp.float32),  # partials
        ),
        grid_spec=pltpu.PrefetchScalarGridSpec(
            num_scalar_prefetch=0,
            grid=grid,
            in_specs=[
                pl.BlockSpec((tile_n, d), lambda i: (i, 0)),      # x tile (bf16)
                pl.BlockSpec((8, tile_n), lambda i: (0, i)),      # augT tile (bf16)
                pl.BlockSpec((d, h_p), lambda i: (0, 0)),         # W1
                pl.BlockSpec((1, h_p), lambda i: (0, 0)),         # b1
                pl.BlockSpec((h_p, _HEADW), lambda i: (0, 0)),    # fused head W
                pl.BlockSpec((1, _HEADW), lambda i: (0, 0)),      # fused head b
            ],
            out_specs=[
                pl.BlockSpec((tile_n, _HEADW), lambda i: (i, 0)),       # head slab
                pl.BlockSpec((None, 8, _HEADW), lambda i: (i, 0, 0)),   # per-tile partial
            ],
        ),
        compiler_params=pltpu.CompilerParams(
            # no carried state -> atom axis is truly parallel (v7x megacore)
            dimension_semantics=("parallel",),
            vmem_limit_bytes=48 << 20,
        ),
        cost_estimate=cost,
    )(x_p, aug_t, w1_p, b1_p, w_head, b_head)

    # tiny (num_tiles, 8, 128) reduction of the per-tile partials
    red = jnp.sum(part, axis=0)

    # ModelWrapper just unpacks and returns the triple.
    energy = red[0, 0]
    forces = head_out[:n, 1:4].astype(jnp.float32)
    stress = red[1:4, 1:4]
    return energy, forces, stress


def _reference(x, pos, params):
    """Pure-JAX reference mirroring the kernel's mixed precision
    (bf16 MXU operands, f32 accumulation, bf16 per-atom head storage)."""
    bf16 = jnp.bfloat16
    w1, b1, w2, b2, wf = params
    h = jnp.dot(x.astype(bf16), w1.astype(bf16),
                preferred_element_type=jnp.float32) + b1
    h = jnp.maximum(h, 0.0)
    hb = h.astype(bf16)
    e_atom = jnp.dot(hb, w2.astype(bf16), preferred_element_type=jnp.float32) + b2
    f = jnp.dot(hb, wf.astype(bf16), preferred_element_type=jnp.float32)
    e_atom_b = e_atom.astype(bf16).astype(jnp.float32)
    f_b = f.astype(bf16).astype(jnp.float32)
    pos_b = pos.astype(bf16).astype(jnp.float32)
    energy = jnp.sum(e_atom_b)
    forces = f_b
    stress = pos_b.T @ f_b
    return energy, forces, stress


if __name__ == "__main__":
    key = jax.random.PRNGKey(0)
    n_atoms, d_feat, d_hidden = 64, 32, 64

    k = jax.random.split(key, 7)
    x = jax.random.normal(k[0], (n_atoms, d_feat), jnp.float32)
    pos = jax.random.normal(k[1], (n_atoms, 3), jnp.float32)

    # Deterministic synthetic parameters (no checkpoint load).
    params = (
        jax.random.normal(k[2], (d_feat, d_hidden), jnp.float32) * 0.1,   # W1
        jax.random.normal(k[3], (1, d_hidden),      jnp.float32) * 0.1,   # b1
        jax.random.normal(k[4], (d_hidden, 1),      jnp.float32) * 0.1,   # W2
        jax.random.normal(k[5], (1, 1),             jnp.float32) * 0.1,   # b2
        jax.random.normal(k[6], (d_hidden, 3),      jnp.float32) * 0.1,   # Wf
    )

    energy, forces, stress = jax.block_until_ready(
        model_wrapper_forward(x, pos, params))

    e_ref, f_ref, s_ref = _reference(x, pos, params)
    assert np.allclose(np.asarray(energy), np.asarray(e_ref), rtol=5e-3, atol=5e-3)
    assert np.allclose(np.asarray(forces), np.asarray(f_ref), rtol=5e-3, atol=5e-3)
    assert np.allclose(np.asarray(stress), np.asarray(s_ref), rtol=5e-3, atol=5e-3)

    print("KERNEL_OK")
</pallas_src>

<mosaic_0001>
module attributes {stable_mosaic.version = 11 : i64} {
  func.func @_model_kernel(%arg0: i32, %arg1: memref<128x32xbf16, #tpu.memory_space<vmem>>, %arg2: memref<8x128xbf16, #tpu.memory_space<vmem>>, %arg3: memref<32x128xbf16, #tpu.memory_space<vmem>>, %arg4: memref<1x128xf32, #tpu.memory_space<vmem>>, %arg5: memref<128x128xbf16, #tpu.memory_space<vmem>>, %arg6: memref<1x128xf32, #tpu.memory_space<vmem>>, %arg7: memref<128x128xbf16, #tpu.memory_space<vmem>>, %arg8: memref<1x8x128xf32, #tpu.memory_space<vmem>>) attributes {dimension_semantics = [#tpu.dimension_semantics<parallel>], iteration_bounds = array<i64: 1>, scalar_prefetch = 0 : i64, scratch_operands = 0 : i64, tpu.core_type = #tpu.core_type<tc>, window_params = [{transform_indices = @transform_0, window_bounds = array<i64: 128, 32>}, {transform_indices = @transform_1, window_bounds = array<i64: 8, 128>}, {pipeline_mode = #tpu.pipeline_mode<synchronous>, transform_indices = @transform_2, window_bounds = array<i64: 32, 128>}, {pipeline_mode = #tpu.pipeline_mode<synchronous>, transform_indices = @transform_3, window_bounds = array<i64: 1, 128>}, {pipeline_mode = #tpu.pipeline_mode<synchronous>, transform_indices = @transform_4, window_bounds = array<i64: 128, 128>}, {pipeline_mode = #tpu.pipeline_mode<synchronous>, transform_indices = @transform_5, window_bounds = array<i64: 1, 128>}, {transform_indices = @transform_6, window_bounds = array<i64: 128, 128>}, {transform_indices = @transform_7, window_bounds = array<i64: 1, 8, 128>}]} {
    %c0 = arith.constant 0 : index
    %c0_0 = arith.constant 0 : index
    %0 = vector.load %arg1[%c0, %c0_0] : memref<128x32xbf16, #tpu.memory_space<vmem>>, vector<128x32xbf16>
    %c0_1 = arith.constant 0 : index
    %c0_2 = arith.constant 0 : index
    %1 = vector.load %arg3[%c0_1, %c0_2] : memref<32x128xbf16, #tpu.memory_space<vmem>>, vector<32x128xbf16>
    %cst = arith.constant dense<0.000000e+00> : vector<128x128xf32>
    %2 = tpu.matmul %0, %1, %cst {dimension_numbers = #tpu.dot_dimension_numbers<[1], [0], [0], [1], [0, 0, 1, 1], [], []>} : vector<128x32xbf16>, vector<32x128xbf16>, vector<128x128xf32> -> vector<128x128xf32>
    %c0_3 = arith.constant 0 : index
    %c0_4 = arith.constant 0 : index
    %3 = vector.load %arg4[%c0_3, %c0_4] : memref<1x128xf32, #tpu.memory_space<vmem>>, vector<1x128xf32>
    %4 = vector.broadcast %3 : vector<1x128xf32> to vector<128x128xf32>
    %5 = arith.addf %2, %4 : vector<128x128xf32>
    %cst_5 = arith.constant 0.000000e+00 : f32
    %6 = vector.broadcast %cst_5 : f32 to vector<128x128xf32>
    %7 = arith.maximumf %5, %6 : vector<128x128xf32>
    %8 = arith.truncf %7 : vector<128x128xf32> to vector<128x128xbf16>
    %c0_6 = arith.constant 0 : index
    %c0_7 = arith.constant 0 : index
    %9 = vector.load %arg5[%c0_6, %c0_7] : memref<128x128xbf16, #tpu.memory_space<vmem>>, vector<128x128xbf16>
    %cst_8 = arith.constant dense<0.000000e+00> : vector<128x128xf32>
    %10 = tpu.matmul %8, %9, %cst_8 {dimension_numbers = #tpu.dot_dimension_numbers<[1], [0], [0], [1], [0, 0, 1, 1], [], []>} : vector<128x128xbf16>, vector<128x128xbf16>, vector<128x128xf32> -> vector<128x128xf32>
    %c0_9 = arith.constant 0 : index
    %c0_10 = arith.constant 0 : index
    %11 = vector.load %arg6[%c0_9, %c0_10] : memref<1x128xf32, #tpu.memory_space<vmem>>, vector<1x128xf32>
    %12 = vector.broadcast %11 : vector<1x128xf32> to vector<128x128xf32>
    %13 = arith.addf %10, %12 : vector<128x128xf32>
    %14 = arith.truncf %13 : vector<128x128xf32> to vector<128x128xbf16>
    %c0_11 = arith.constant 0 : index
    %c0_12 = arith.constant 0 : index
    %15 = vector.load %arg7[%c0_11, %c0_12] : memref<128x128xbf16, #tpu.memory_space<vmem>>, vector<128x128xbf16>
    tpu.vector_store %arg7[%c0_11, %c0_12], %14 {strides = array<i32>} : memref<128x128xbf16, #tpu.memory_space<vmem>>, vector<128x128xbf16>,
    %c0_13 = arith.constant 0 : index
    %c0_14 = arith.constant 0 : index
    %16 = vector.load %arg2[%c0_13, %c0_14] : memref<8x128xbf16, #tpu.memory_space<vmem>>, vector<8x128xbf16>
    %cst_15 = arith.constant dense<0.000000e+00> : vector<8x128xf32>
    %17 = tpu.matmul %16, %14, %cst_15 {dimension_numbers = #tpu.dot_dimension_numbers<[1], [0], [0], [1], [0, 0, 1, 1], [], []>} : vector<8x128xbf16>, vector<128x128xbf16>, vector<8x128xf32> -> vector<8x128xf32>
    %c0_16 = arith.constant 0 : index
    %c0_17 = arith.constant 0 : index
    %c0_18 = arith.constant 0 : index
    %18 = vector.load %arg8[%c0_16, %c0_17, %c0_18] : memref<1x8x128xf32, #tpu.memory_space<vmem>>, vector<1x8x128xf32>
    %19 = vector.shape_cast %18 : vector<1x8x128xf32> to vector<8x128xf32>
    %20 = vector.shape_cast %17 : vector<8x128xf32> to vector<1x8x128xf32>
    tpu.vector_store %arg8[%c0_16, %c0_17, %c0_18], %20 {strides = array<i32>} : memref<1x8x128xf32, #tpu.memory_space<vmem>>, vector<1x8x128xf32>,
    return
  }
  func.func @transform_0(%arg0: i32) -> (i32, i32) {
    %c0_i32 = arith.constant 0 : i32
    %c0_i32_0 = arith.constant 0 : i32
    return %arg0, %c0_i32 : i32, i32
  }
  func.func @transform_1(%arg0: i32) -> (i32, i32) {
    %c0_i32 = arith.constant 0 : i32
    %c0_i32_0 = arith.constant 0 : i32
    return %c0_i32, %arg0 : i32, i32
  }
  func.func @transform_2(%arg0: i32) -> (i32, i32) {
    %c0_i32 = arith.constant 0 : i32
    %c0_i32_0 = arith.constant 0 : i32
    %c0_i32_1 = arith.constant 0 : i32
    return %c0_i32, %c0_i32_0 : i32, i32
  }
  func.func @transform_3(%arg0: i32) -> (i32, i32) {
    %c0_i32 = arith.constant 0 : i32
    %c0_i32_0 = arith.constant 0 : i32
    %c0_i32_1 = arith.constant 0 : i32
    return %c0_i32, %c0_i32_0 : i32, i32
  }
  func.func @transform_4(%arg0: i32) -> (i32, i32) {
    %c0_i32 = arith.constant 0 : i32
    %c0_i32_0 = arith.constant 0 : i32
    %c0_i32_1 = arith.constant 0 : i32
    return %c0_i32, %c0_i32_0 : i32, i32
  }
  func.func @transform_5(%arg0: i32) -> (i32, i32) {
    %c0_i32 = arith.constant 0 : i32
    %c0_i32_0 = arith.constant 0 : i32
    %c0_i32_1 = arith.constant 0 : i32
    return %c0_i32, %c0_i32_0 : i32, i32
  }
  func.func @transform_6(%arg0: i32) -> (i32, i32) {
    %c0_i32 = arith.constant 0 : i32
    %c0_i32_0 = arith.constant 0 : i32
    return %arg0, %c0_i32 : i32, i32
  }
  func.func @transform_7(%arg0: i32) -> (i32, i32, i32) {
    %c0_i32 = arith.constant 0 : i32
    %c0_i32_0 = arith.constant 0 : i32
    %c0_i32_1 = arith.constant 0 : i32
    return %arg0, %c0_i32, %c0_i32_0 : i32, i32, i32
  }
}

</mosaic_0001>

<bundles_post_ra>
// kernel: tpu_custom_call.1
= control target key start
LH: loop header
LB: loop body
LE: loop exit
PB: predicated region body
PF: predicated region fallthrough
CT: control target
= control target key end

     0   :  { %13 = vsyncpa [#allocation3], 0  ;;  %s864_s0 = inlined_call_operand.vmem [shape: bf16[128,32], index: 0, kind: input, shape index: {}]   ;;  %s865_s1 = inlined_call_operand.hbm [shape: bf16[8,128], index: 1, kind: input, shape index: {}]   ;;  %s866_s2 = inlined_call_operand.vmem [shape: bf16[32,128], index: 2, kind: input, shape index: {}]   ;;  %s867_s3 = inlined_call_operand.vmem [shape: f32[1,128], index: 3, kind: input, shape index: {}]   ;;  %s868_s4 = inlined_call_operand.vmem [shape: bf16[128,128], index: 4, kind: input, shape index: {}]   ;;  %s869_s5 = inlined_call_operand.vmem [shape: f32[1,128], index: 5, kind: input, shape index: {}]   ;;  %s870_s6 = inlined_call_operand.hbm [shape: bf16[128,128], index: 6, kind: output, shape index: {0}]   ;;  %s871_s7 = inlined_call_operand.hbm [shape: f32[1,8,128], index: 7, kind: output, shape index: {1}]  }
   0x1   :  { %14 = vsyncpa [#allocation4], 0 }
   0x2   :  { %15 = vsyncpa [#allocation7], 0  ;;  %s23_s26 = sshll.u32 %s865_s1, 4  ;;  %s703_s27 = smov [#allocation2]   ;;  %s24_s26 = int_to_ptr.hbm [resolvable:$true] %s23_s26 }
   0x3   :  { %s25_s28 = sshll.u32 %s703_s27, 4  ;;  %s26_s28 = int_to_ptr.vmem [resolvable:$true] %s25_s28 }
   0x4   :  { %28 = dma.hbm_to_vmem [thread:$0]  %s24_s26, 64, %s26_s28, [#allocation3]  }
   0x5   :  { %697 = dma.done.wait [#allocation3], 64  }
   0x6   :  { %698 = vsyncadd [#allocation3], 4294967232  ;;  %v552_v0 = vld [vmem:[%s866_s2 + $0x8] sm:$0xff]  ;;  %v551_v1 = vld [vmem:[%s866_s2] sm:$0xff]  ;;  %vm118_vm0 = vcmask 261120   ;;  %s434_s19 = sshll.u32 %s870_s6, 4  ;;  %s435_s19 = int_to_ptr.hbm [resolvable:$true] %s434_s19 }
   0x7   :  { %149 = vmatpush.bf16.msra.mxu0 %v552_v0  ;;  %608 = vmatpush.bf16.msra.mxu2 %v552_v0  ;;  %v543_v2 = vld [vmem:[%s864_s0] sm:$0xff]  ;;  %v544_v3 = vld [vmem:[%s864_s0 + $0x8] sm:$0xff]  ;;  %v545_v4 = vld [vmem:[%s864_s0 + $0x10] sm:$0xff]  ;;  %s705_s20 = smov 64   ;;  %s706_s21 = smov 4  }
   0x8   :  { %v548_v5 = vld [vmem:[%s864_s0 + $0x28] sm:$0xff]  ;;  %v560_v6 = vld [vmem:[%s868_s4 + $0x38] sm:$0xff]  ;;  %v559_v7 = vld [vmem:[%s868_s4 + $0x30] sm:$0xff]  ;;  %s707_s22 = smov [#allocation6]   ;;  %s448_s26 = sshll.u32 %s871_s7, 4  ;;  %s449_s26 = int_to_ptr.hbm [resolvable:$true] %s448_s26 }
   0x9   :  { %284 = vmatpush.bf16.msra.mxu1 %v560_v6  ;;  %610 = vmatpush.bf16.msra.mxu3 %v560_v6  ;;  %v558_v8 = vld [vmem:[%s868_s4 + $0x28] sm:$0xff]  ;;  %v546_v9 = vld [vmem:[%s864_s0 + $0x18] sm:$0xff]  ;;  %v557_v10 = vld [vmem:[%s868_s4 + $0x20] sm:$0xff]  ;;  %s446_s23 = sshll.u32 %s707_s22, 4  ;;  %s447_s23 = int_to_ptr.vmem [resolvable:$true] %s446_s23 }
   0xa   :  { %v549_v11 = vld [vmem:[%s864_s0 + $0x30] sm:$0xff]  ;;  %v547_v12 = vld [vmem:[%s864_s0 + $0x20] sm:$0xff]  ;;  %v550_v13 = vld [vmem:[%s864_s0 + $0x38] sm:$0xff] }
   0xb   :  { %150 = vmatpush.bf16.msra.mxu0 %v551_v1  ;;  %609 = vmatpush.bf16.msra.mxu2 %v551_v1  ;;  %v556_v14 = vld [vmem:[%s868_s4 + $0x18] sm:$0xff]  ;;  %v555_v15 = vld [vmem:[%s868_s4 + $0x10] sm:$0xff]  ;;  %v554_v16 = vld [vmem:[%s868_s4 + $0x8] sm:$0xff] }
   0xc   :  { %v553_v17 = vld [vmem:[%s868_s4] sm:$0xff] }
   0xd   :  { %285 = vmatpush.bf16.msra.mxu1 %v559_v7  ;;  %611 = vmatpush.bf16.msra.mxu3 %v559_v7  ;;  %v623_v19 = vld [vmem:[%s867_s3] ss:$0 sm:$0xff] }
   0xe   :  { %503 = vmatmul.msk.bf16.vlgmr.msra.gmra.mxu0 %vm118_vm0, %v543_v2  ;;  %508 = vmatmul.msk.bf16.vlgmr.msra.gmra.mxu2 %vm118_vm0, %v548_v5 }
  0x11   :  { %286 = vmatpush.bf16.msra.mxu1 %v558_v8  ;;  %612 = vmatpush.bf16.msra.mxu3 %v558_v8 }
  0x15   :  { %287 = vmatpush.bf16.msra.mxu1 %v557_v10  ;;  %613 = vmatpush.bf16.msra.mxu3 %v557_v10 }
  0x19   :  { %288 = vmatpush.bf16.msra.mxu1 %v556_v14  ;;  %614 = vmatpush.bf16.msra.mxu3 %v556_v14 }
  0x1d   :  { %289 = vmatpush.bf16.msra.mxu1 %v555_v15  ;;  %615 = vmatpush.bf16.msra.mxu3 %v555_v15 }
  0x1e   :  { %504 = vmatmul.msk.bf16.gmra.mxu0 %vm118_vm0, %v544_v3  ;;  %509 = vmatmul.msk.bf16.gmra.mxu2 %vm118_vm0, %v549_v11 }
  0x21   :  { %290 = vmatpush.bf16.msra.mxu1 %v554_v16  ;;  %616 = vmatpush.bf16.msra.mxu3 %v554_v16 }
  0x25   :  { %291 = vmatpush.bf16.msra.mxu1 %v553_v17  ;;  %617 = vmatpush.bf16.msra.mxu3 %v553_v17 }
  0x2e   :  { %505 = vmatmul.msk.bf16.gmra.mxu0 %vm118_vm0, %v545_v4  ;;  %510 = vmatmul.msk.bf16.gmra.mxu2 %vm118_vm0, %v550_v13 }
  0x3e   :  { %506 = vmatmul.msk.bf16.gmra.mxu0 %vm118_vm0, %v546_v9 }
  0x4e   :  { %507 = vmatmul.msk.bf16.gmra.mxu0 %vm118_vm0, %v547_v12  ;;  %v819_v12 = vld [vmem:[%s869_s5] ss:$0 sm:$0xff]  ;;  %s704_s5 = smov [#allocation5]  }
  0x4f   :  { %s432_s16 = sshll.u32 %s704_s5, 4  ;;  %s433_s16 = int_to_ptr.vmem [resolvable:$true] %s432_s16 }
  0x8b   :  { %v152_v18 = vpop.f32.mrf.mxu0 }
  0x8c   :  { %v153_v20 = vadd.f32 %v623_v19, %v152_v18 }
  0x8e   :  { %v192_v23 = vmax.f32 %v153_v20, 0.0 }
  0x91   :  { %v177_v48 = vpop.f32.mrf.mxu2 }
  0x92   :  { %v178_v57 = vadd.f32 %v623_v19, %v177_v48 }
  0x93   :  { %v154_v21 = vpop.f32.mrf.mxu0 }
  0x94   :  { %v155_v22 = vadd.f32 %v623_v19, %v154_v21  ;;  %v202_v59 = vmax.f32 %v178_v57, 0.0 }
  0x96   :  { %v193_v24 = vmax.f32 %v155_v22, 0.0 }
  0x98   :  { %v208_v25 = vpack.c.bf16 %v193_v24, %v192_v23 }
  0x99   :  { %v179_v52 = vpop.f32.mrf.mxu2 }
  0x9a   :  { %292 = vmatmul.bf16.vlgmr.msra.gmra.mxu1 %v208_v25  ;;  %v180_v58 = vadd.f32 %v623_v19, %v179_v52 }
  0x9b   :  { %v157_v26 = vpop.f32.mrf.mxu0 }
  0x9c   :  { %v158_v27 = vadd.f32 %v623_v19, %v157_v26  ;;  %v203_v60 = vmax.f32 %v180_v58, 0.0 }
  0x9e   :  { %v194_v30 = vmax.f32 %v158_v27, 0.0  ;;  %v213_v61 = vpack.c.bf16 %v203_v60, %v202_v59 }
  0xa1   :  { %v182_v56 = vpop.f32.mrf.mxu2 }
  0xa2   :  { %v183_v63 = vadd.f32 %v623_v19, %v182_v56 }
  0xa3   :  { %v159_v28 = vpop.f32.mrf.mxu0 }
  0xa4   :  { %v160_v29 = vadd.f32 %v623_v19, %v159_v28  ;;  %v204_v2 = vmax.f32 %v183_v63, 0.0 }
  0xa6   :  { %v195_v31 = vmax.f32 %v160_v29, 0.0 }
  0xa8   :  { %v209_v32 = vpack.c.bf16 %v195_v31, %v194_v30 }
  0xa9   :  { %v184_v62 = vpop.f32.mrf.mxu2 }
  0xaa   :  { %297 = vmatmul.bf16.gmra.mxu1 %v209_v32  ;;  %v185_v0 = vadd.f32 %v623_v19, %v184_v62 }
  0xab   :  { %v162_v33 = vpop.f32.mrf.mxu0 }
  0xac   :  { %v163_v34 = vadd.f32 %v623_v19, %v162_v33  ;;  %v205_v3 = vmax.f32 %v185_v0, 0.0 }
  0xae   :  { %v196_v37 = vmax.f32 %v163_v34, 0.0  ;;  %v214_v4 = vpack.c.bf16 %v205_v3, %v204_v2 }
  0xb1   :  { %v187_v1 = vpop.f32.mrf.mxu2 }
  0xb2   :  { %v188_v6 = vadd.f32 %v623_v19, %v187_v1 }
  0xb3   :  { %v164_v35 = vpop.f32.mrf.mxu0 }
  0xb4   :  { %v165_v36 = vadd.f32 %v623_v19, %v164_v35  ;;  %v206_v8 = vmax.f32 %v188_v6, 0.0 }
  0xb6   :  { %v197_v38 = vmax.f32 %v165_v36, 0.0 }
  0xb8   :  { %v210_v39 = vpack.c.bf16 %v197_v38, %v196_v37 }
  0xb9   :  { %v189_v5 = vpop.f32.mrf.mxu2 }
  0xba   :  { %302 = vmatmul.bf16.gmra.mxu1 %v210_v39  ;;  %v190_v7 = vadd.f32 %v623_v19, %v189_v5 }
  0xbb   :  { %v167_v40 = vpop.f32.mrf.mxu0 }
  0xbc   :  { %v168_v41 = vadd.f32 %v623_v19, %v167_v40  ;;  %v207_v9 = vmax.f32 %v190_v7, 0.0 }
  0xbe   :  { %v198_v44 = vmax.f32 %v168_v41, 0.0  ;;  %v215_v10 = vpack.c.bf16 %v207_v9, %v206_v8 }
  0xc3   :  { %v169_v42 = vpop.f32.mrf.mxu0 }
  0xc4   :  { %v170_v43 = vadd.f32 %v623_v19, %v169_v42 }
  0xc6   :  { %v199_v45 = vmax.f32 %v170_v43, 0.0 }
  0xc8   :  { %v211_v46 = vpack.c.bf16 %v199_v45, %v198_v44 }
  0xca   :  { %307 = vmatmul.bf16.gmra.mxu1 %v211_v46 }
  0xcb   :  { %v172_v47 = vpop.f32.mrf.mxu0 }
  0xcc   :  { %v173_v49 = vadd.f32 %v623_v19, %v172_v47 }
  0xce   :  { %v200_v53 = vmax.f32 %v173_v49, 0.0 }
  0xd3   :  { %v174_v50 = vpop.f32.mrf.mxu0 }
  0xd4   :  { %v175_v51 = vadd.f32 %v623_v19, %v174_v50 }
  0xd6   :  { %v201_v54 = vmax.f32 %v175_v51, 0.0 }
  0xd8   :  { %v212_v55 = vpack.c.bf16 %v201_v54, %v200_v53 }
  0xda   :  { %312 = vmatmul.bf16.vlgmr.msra.gmra.mxu3 %v212_v55 }
  0xea   :  { %317 = vmatmul.bf16.gmra.mxu3 %v213_v61 }
  0xfa   :  { %322 = vmatmul.bf16.gmra.mxu3 %v214_v4 }
 0x10a   :  { %327 = vmatmul.bf16.gmra.mxu3 %v215_v10 }
 0x117   :  { %v293_v11 = vpop.f32.mrf.mxu1 }
 0x118   :  { %v294_v13 = vadd.f32 %v819_v12, %v293_v11 }
 0x11a   :  { %v333_v15 = vpack.c.bf16 %v294_v13, %v294_v13 }
 0x11c   :  { %v823_v20 = vunpack.c.l.b16 %v333_v15 }
 0x11f   :  { %v295_v14 = vpop.f32.mrf.mxu1 }
 0x120   :  { %v296_v16 = vadd.f32 %v819_v12, %v295_v14 }
 0x122   :  { %v334_v17 = vpack.c.bf16 %v296_v16, %v296_v16  ;;  %v564_v18 = vpack.c.bf16 %v296_v16, %v294_v13 }
 0x124   :  { %565 = vst [vmem:[#allocation5] sm:$0xff] %v564_v18   ;;  %v825_v19 = vunpack.c.l.b16 %v334_v17 }
 0x126   :  { %v398_v21 = vpack.c.b16 %v825_v19, %v823_v20 }
 0x127   :  { %v298_v22 = vpop.f32.mrf.mxu1 }
 0x128   :  { %v299_v23 = vadd.f32 %v819_v12, %v298_v22 }
 0x12a   :  { %v335_v25 = vpack.c.bf16 %v299_v23, %v299_v23 }
 0x12c   :  { %v831_v29 = vunpack.c.l.b16 %v335_v25 }
 0x12f   :  { %v300_v24 = vpop.f32.mrf.mxu1 }
 0x130   :  { %v301_v26 = vadd.f32 %v819_v12, %v300_v24 }
 0x132   :  { %v336_v27 = vpack.c.bf16 %v301_v26, %v301_v26  ;;  %v569_v28 = vpack.c.bf16 %v301_v26, %v299_v23 }
 0x134   :  { %601 = vst [vmem:[#allocation5 + $0x8] sm:$0xff] %v569_v28   ;;  %v833_v30 = vunpack.c.l.b16 %v336_v27 }
 0x136   :  { %v399_v31 = vpack.c.b16 %v833_v30, %v831_v29 }
 0x137   :  { %v303_v32 = vpop.f32.mrf.mxu1 }
 0x138   :  { %v304_v33 = vadd.f32 %v819_v12, %v303_v32 }
 0x13a   :  { %v337_v35 = vpack.c.bf16 %v304_v33, %v304_v33 }
 0x13c   :  { %v839_v39 = vunpack.c.l.b16 %v337_v35 }
 0x13f   :  { %v305_v34 = vpop.f32.mrf.mxu1 }
 0x140   :  { %v306_v36 = vadd.f32 %v819_v12, %v305_v34  ;;  %v365_v34 = vld [vmem:[#allocation2] sm:$0xf] }
 0x142   :  { %v338_v37 = vpack.c.bf16 %v306_v36, %v306_v36  ;;  %v574_v38 = vpack.c.bf16 %v306_v36, %v304_v33 }
 0x144   :  { %602 = vst [vmem:[#allocation5 + $0x10] sm:$0xff] %v574_v38   ;;  %v387_v40 = vunpack.c.l.b16 %v338_v37 }
 0x146   :  { %v400_v41 = vpack.c.b16 %v387_v40, %v839_v39 }
 0x147   :  { %v308_v42 = vpop.f32.mrf.mxu1 }
 0x148   :  { %v309_v43 = vadd.f32 %v819_v12, %v308_v42 }
 0x14a   :  { %v339_v45 = vpack.c.bf16 %v309_v43, %v309_v43 }
 0x14c   :  { %v388_v49 = vunpack.c.l.b16 %v339_v45 }
 0x14f   :  { %v310_v44 = vpop.f32.mrf.mxu1 }
 0x150   :  { %v311_v46 = vadd.f32 %v819_v12, %v310_v44 }
 0x152   :  { %v340_v47 = vpack.c.bf16 %v311_v46, %v311_v46  ;;  %v579_v48 = vpack.c.bf16 %v311_v46, %v309_v43 }
 0x154   :  { %603 = vst [vmem:[#allocation5 + $0x18] sm:$0xff] %v579_v48   ;;  %v389_v50 = vunpack.c.l.b16 %v340_v47 }
 0x156   :  { %v401_v51 = vpack.c.b16 %v389_v50, %v388_v49 }
 0x15d   :  { %v313_v52 = vpop.f32.mrf.mxu3 }
 0x15e   :  { %v314_v54 = vadd.f32 %v819_v12, %v313_v52 }
 0x160   :  { %v341_v26 = vpack.c.bf16 %v314_v54, %v314_v54 }
 0x162   :  { %v390_v32 = vunpack.c.l.b16 %v341_v26 }
 0x165   :  { %v315_v53 = vpop.f32.mrf.mxu3 }
 0x166   :  { %v316_v55 = vadd.f32 %v819_v12, %v315_v53 }
 0x168   :  { %v584_v56 = vpack.c.bf16 %v316_v55, %v314_v54  ;;  %v342_v23 = vpack.c.bf16 %v316_v55, %v316_v55 }
 0x16a   :  { %604 = vst [vmem:[#allocation5 + $0x20] sm:$0xff] %v584_v56  }
 0x16d   :  { %v318_v57 = vpop.f32.mrf.mxu3 }
 0x16e   :  { %v319_v59 = vadd.f32 %v819_v12, %v318_v57 }
 0x170   :  { %v343_v18 = vpack.c.bf16 %v319_v59, %v319_v59 }
 0x172   :  { %v392_v27 = vunpack.c.l.b16 %v343_v18 }
 0x175   :  { %v320_v58 = vpop.f32.mrf.mxu3 }
 0x176   :  { %v321_v60 = vadd.f32 %v819_v12, %v320_v58 }
 0x178   :  { %v589_v61 = vpack.c.bf16 %v321_v60, %v319_v59  ;;  %v344_v15 = vpack.c.bf16 %v321_v60, %v321_v60 }
 0x17a   :  { %605 = vst [vmem:[#allocation5 + $0x28] sm:$0xff] %v589_v61   ;;  %v393_v24 = vunpack.c.l.b16 %v344_v15 }
 0x17c   :  { %v403_v28 = vpack.c.b16 %v393_v24, %v392_v27 }
 0x17d   :  { %v323_v62 = vpop.f32.mrf.mxu3 }
 0x17e   :  { %v324_v0 = vadd.f32 %v819_v12, %v323_v62 }
 0x180   :  { %v345_v11 = vpack.c.bf16 %v324_v0, %v324_v0 }
 0x182   :  { %v394_v22 = vunpack.c.l.b16 %v345_v11 }
 0x185   :  { %v325_v63 = vpop.f32.mrf.mxu3 }
 0x186   :  { %v326_v1 = vadd.f32 %v819_v12, %v325_v63 }
 0x188   :  { %v594_v2 = vpack.c.bf16 %v326_v1, %v324_v0  ;;  %v346_v8 = vpack.c.bf16 %v326_v1, %v326_v1 }
 0x18a   :  { %606 = vst [vmem:[#allocation5 + $0x30] sm:$0xff] %v594_v2   ;;  %v395_v16 = vunpack.c.l.b16 %v346_v8 }
 0x18c   :  { %v404_v25 = vpack.c.b16 %v395_v16, %v394_v22 }
 0x18d   :  { %v328_v3 = vpop.f32.mrf.mxu3 }
 0x18e   :  { %v329_v4 = vadd.f32 %v819_v12, %v328_v3 }
 0x190   :  { %v347_v6 = vpack.c.bf16 %v329_v4, %v329_v4 }
 0x192   :  { %v396_v13 = vunpack.c.l.b16 %v347_v6 }
 0x195   :  { %v330_v5 = vpop.f32.mrf.mxu3 }
 0x196   :  { %v331_v7 = vadd.f32 %v819_v12, %v330_v5  ;;  %v391_v12 = vunpack.c.l.b16 %v342_v23 }
 0x198   :  { %v348_v9 = vpack.c.bf16 %v331_v7, %v331_v7  ;;  %v599_v10 = vpack.c.bf16 %v331_v7, %v329_v4  ;;  %v402_v33 = vpack.c.b16 %v391_v12, %v390_v32 }
 0x19a   :  { %607 = vst [vmem:[#allocation5 + $0x38] sm:$0xff] %v599_v10   ;;  %v397_v14 = vunpack.c.l.b16 %v348_v9 }
 0x19b   :  { %440 = dma.vmem_to_hbm [thread:$0]  %s433_s16, 1024, %s435_s19, [#allocation4], %s705_s20, %s705_s20, %s706_s21  }
 0x19c   :  { %v405_v17 = vpack.c.b16 %v397_v14, %v396_v13 }
 0x19e   :  { %414 = vmatpush.bf16.msrb.mxu2 %v405_v17 }
 0x1a2   :  { %415 = vmatpush.bf16.msrb.mxu2 %v404_v25 }
 0x1a6   :  { %416 = vmatpush.bf16.msrb.mxu2 %v403_v28 }
 0x1aa   :  { %417 = vmatpush.bf16.msrb.mxu2 %v402_v33 }
 0x1ae   :  { %418 = vmatpush.bf16.msrb.mxu2 %v401_v51 }
 0x1b2   :  { %419 = vmatpush.bf16.msrb.mxu2 %v400_v41 }
 0x1b6   :  { %420 = vmatpush.bf16.msrb.mxu2 %v399_v31 }
 0x1ba   :  { %421 = vmatpush.bf16.msrb.mxu2 %v398_v21 }
 0x1bd   :  { %422 = vmatmul.bf16.vlgmr.msrb.gmra.mxu2 %v365_v34 }
 0x240   :  { %v423_v20 = vpop.f32.mrf.mxu2 }
 0x241   :  { %427 = vst [vmem:[#allocation6] sm:$0xff] %v423_v20 }
 0x242   :  { %451 = dma.vmem_to_hbm [thread:$0]  %s447_s23, 128, %s449_s26, [#allocation7]  }
 0x248   :  { %v425_v19 = vpop.f32.mrf.mxu2 }
 0x249   :  { %699 = dma.done.wait [#allocation4], 1024  }
 0x24a   :  { %700 = vsyncadd [#allocation4], 4294966272 }
 0x24b   :  { %701 = dma.done.wait [#allocation7], 128  }
 0x24c   :  { %702 = vsyncadd [#allocation7], 4294967168 }
 0x24d   :  { %460 = vsyncpa [#allocation3], 1 }
 0x24e   :  { %461 = vsyncpa [#allocation4], 1 }
 0x24f   :  { %462 = vsyncpa [#allocation7], 1 }

</bundles_post_ra>
